<compile_context>
chip_gen: v7x
topology: tpu7x:2x2x1
jax: 0.10.0
libtpu: 0.0.40
codegen_flags: <defaults>
</compile_context>

<pallas_src>
import functools

import jax
import jax.numpy as jnp
from jax.experimental import pallas as pl
from jax.experimental.pallas import tpu as pltpu


def _round_up(a: int, m: int) -> int:
    return ((a + m - 1) // m) * m


def _same_pad_kernel(x_ref, o_ref, *, pad_h, pad_w, fuse_rows):
    # x_ref block: (T, H, W); o_ref block: (T, H + 2*pad_h, W + 2*pad_w).
    T, H, W = x_ref.shape
    Wo = W + 2 * pad_w

    def pad_cols(rows):
        """(T, R, W) -> (T, R, Wo): replicate first/last column."""
        if pad_w == 0:
            return rows
        R = rows.shape[1]
        left = jnp.broadcast_to(rows[:, :, 0:1], (T, R, pad_w))
        right = jnp.broadcast_to(rows[:, :, W - 1:W], (T, R, pad_w))
        return jnp.concatenate([left, rows, right], axis=2)

    if fuse_rows:
        # Small-W path: build full [left | x | right] rows once and store them
        # as a single lane-0-aligned slab (roughly halves the number of masked
        # vst ops vs. three separate misaligned stores).  The block load has a
        # single use, so Mosaic can stream it rather than keep it live.
        o_ref[:, pad_h:pad_h + H, :] = pad_cols(x_ref[...])
    else:
        # Wide-W path: direct slice stores (already mostly lane-dense); avoids
        # materializing a padded-row intermediate comparable to the whole
        # output block.
        o_ref[:, pad_h:pad_h + H, pad_w:pad_w + W] = x_ref[...]
        if pad_w > 0:
            o_ref[:, pad_h:pad_h + H, 0:pad_w] = jnp.broadcast_to(
                x_ref[:, :, 0:1], (T, H, pad_w))
            o_ref[:, pad_h:pad_h + H, pad_w + W:pad_w + W + pad_w] = (
                jnp.broadcast_to(x_ref[:, :, W - 1:W], (T, H, pad_w)))

    if pad_h > 0:
        # Top / bottom stripes built from the first / last *input* row (the
        # row is already W-padded so corners come along for free).  No o_ref
        # read-back -> no store->load dependency on the output buffer.
        top = pad_cols(x_ref[:, 0:1, :])          # (T, 1, Wo)
        bot = pad_cols(x_ref[:, H - 1:H, :])      # (T, 1, Wo)
        o_ref[:, 0:pad_h, :] = jnp.broadcast_to(top, (T, pad_h, Wo))
        o_ref[:, pad_h + H:pad_h + H + pad_h, :] = jnp.broadcast_to(
            bot, (T, pad_h, Wo))


def same_padding(x, conv_stride: int = 1, conv_ksize: int = 3):
    """Pallas equivalent of Same_Padding.forward (F.pad mode='replicate')."""
    B, C, H, W = x.shape
    pad_h = int((H * (conv_stride - 1) - conv_stride + conv_ksize) / 2)
    pad_w = int((W * (conv_stride - 1) - conv_stride + conv_ksize) / 2)
    # TODO(synk): the PyTorch formula can produce negative pads for some
    # stride/ksize combos; replicate-pad with negative amounts is undefined
    # here, so guard explicitly (matches the module for its intended configs).
    if pad_h < 0 or pad_w < 0:
        raise ValueError(f"negative padding ({pad_h}, {pad_w}) not supported")
    if pad_h == 0 and pad_w == 0:
        return x

    Ho, Wo = H + 2 * pad_h, W + 2 * pad_w
    BC = B * C
    x2 = x.reshape(BC, H, W)

    # --- Per-plane VMEM footprint, including (sublane, 128-lane) tile padding.
    itemsize = jnp.dtype(x.dtype).itemsize
    sublane = {4: 8, 2: 16, 1: 32}.get(itemsize, 8)
    in_plane = _round_up(H, sublane) * _round_up(W, 128) * itemsize
    out_plane = _round_up(Ho, sublane) * _round_up(Wo, 128) * itemsize
    # Only the small-W path materializes the fused [left|x|right] intermediate;
    # account for it so the chosen T cannot exceed the scoped VMEM limit.
    fuse_rows = (pad_w == 0) or (Wo <= 256)
    work_plane = (_round_up(H, sublane) * _round_up(Wo, 128) * itemsize
                  if (fuse_rows and pad_w > 0) else 0)
    per_plane = in_plane + out_plane + work_plane

    # --- Per-generation VMEM budget (v5e/v6e: 128 MiB, v7x: 64 MiB per TC).
    try:
        vmem_cap = int(pltpu.get_tpu_info().vmem_capacity_bytes)
    except Exception:  # conservative fallback (safe on all generations)
        vmem_cap = 64 * 1024 * 1024
    # Target bytes for one block (input + output + intermediate); the pipeline
    # double-buffers in/out, so steady-state use is ~2x this.  Leave headroom.
    block_budget = max(2 << 20, min(vmem_cap // 4, 32 << 20))
    vmem_limit = int(min(vmem_cap - (4 << 20), 2 * block_budget + (16 << 20)))

    # --- Plane batch T and grid (ceil-div; masked tail, no divisor hunt).
    T = max(1, min(BC, block_budget // per_plane))
    # Split into >= 4 steps (DMA pipelining + megacore sharding on 2-TC chips)
    # only while each block stays >= ~1 MiB (the measured HBM-roofline regime);
    # on single-TC chips this never shrinks blocks just to add steps.
    min_block = 1 << 20
    max_useful_steps = max(1, (BC * per_plane) // min_block)
    target_steps = min(4, BC, max_useful_steps)
    if target_steps > 1:
        T = max(1, min(T, pl.cdiv(BC, target_steps)))
    steps = pl.cdiv(BC, T)
    # Prefer an even step count so both v7x TensorCores get equal work.
    if steps > 1 and steps % 2 == 1:
        T_even = max(1, pl.cdiv(BC, steps + 1))
        if pl.cdiv(BC, T_even) % 2 == 0:
            T = T_even
            steps = pl.cdiv(BC, T)

    kernel = functools.partial(_same_pad_kernel, pad_h=pad_h, pad_w=pad_w,
                               fuse_rows=fuse_rows)
    out = pl.pallas_call(
        kernel,
        out_shape=jax.ShapeDtypeStruct((BC, Ho, Wo), x.dtype),
        grid=(steps,),
        in_specs=[pl.BlockSpec((T, H, W), lambda i: (i, 0, 0))],
        out_specs=pl.BlockSpec((T, Ho, Wo), lambda i: (i, 0, 0)),
        compiler_params=pltpu.CompilerParams(
            dimension_semantics=("parallel",),
            vmem_limit_bytes=vmem_limit),
    )(x2)
    return out.reshape(B, C, Ho, Wo)


if __name__ == "__main__":
    # Main test: the module's default (stride=1, ksize=3) -> pad (1, 1).
    x = jax.random.normal(jax.random.PRNGKey(0), (2, 4, 16, 16),
                          dtype=jnp.float32)
    out = jax.block_until_ready(same_padding(x, conv_stride=1, conv_ksize=3))
    ref = jnp.pad(x, ((0, 0), (0, 0), (1, 1), (1, 1)), mode="edge")
    assert out.shape == (2, 4, 18, 18), out.shape
    assert jnp.allclose(out, ref), "mismatch vs reference edge padding"

    # Odd spatial sizes + wider pad (exercises masked sublane/lane stores).
    x2 = jax.random.normal(jax.random.PRNGKey(1), (1, 3, 13, 17),
                           dtype=jnp.float32)
    out2 = jax.block_until_ready(same_padding(x2, conv_stride=1, conv_ksize=5))
    ref2 = jnp.pad(x2, ((0, 0), (0, 0), (2, 2), (2, 2)), mode="edge")
    assert out2.shape == (1, 3, 17, 21), out2.shape
    assert jnp.allclose(out2, ref2), "mismatch (odd sizes)"

    # Wide-W input (exercises the non-fused, direct-slice-store path).
    x3 = jax.random.normal(jax.random.PRNGKey(2), (1, 2, 16, 256),
                           dtype=jnp.float32)
    out3 = jax.block_until_ready(same_padding(x3, conv_stride=1, conv_ksize=3))
    ref3 = jnp.pad(x3, ((0, 0), (0, 0), (1, 1), (1, 1)), mode="edge")
    assert out3.shape == (1, 2, 18, 258), out3.shape
    assert jnp.allclose(out3, ref3), "mismatch (wide W)"

    print("KERNEL_OK")
</pallas_src>

<mosaic_0001>
module attributes {stable_mosaic.version = 11 : i64} {
  func.func @_same_pad_kernel(%arg0: i32, %arg1: memref<8x16x16xf32, #tpu.memory_space<vmem>>, %arg2: memref<8x18x18xf32, #tpu.memory_space<vmem>>) attributes {dimension_semantics = [#tpu.dimension_semantics<parallel>], iteration_bounds = array<i64: 1>, scalar_prefetch = 0 : i64, scratch_operands = 0 : i64, tpu.core_type = #tpu.core_type<tc>, window_params = [{transform_indices = @transform_0, window_bounds = array<i64: 8, 16, 16>}, {transform_indices = @transform_1, window_bounds = array<i64: 8, 18, 18>}]} {
    %c0 = arith.constant 0 : index
    %c0_0 = arith.constant 0 : index
    %c0_1 = arith.constant 0 : index
    %0 = vector.load %arg1[%c0, %c0_0, %c0_1] : memref<8x16x16xf32, #tpu.memory_space<vmem>>, vector<8x16x16xf32>
    %1 = vector.extract_strided_slice %0 {offsets = [0, 0, 0], sizes = [8, 16, 1], strides = [1, 1, 1]} : vector<8x16x16xf32> to vector<8x16x1xf32>
    %2 = vector.extract_strided_slice %0 {offsets = [0, 0, 15], sizes = [8, 16, 1], strides = [1, 1, 1]} : vector<8x16x16xf32> to vector<8x16x1xf32>
    %3 = tpu.concatenate %1, %0, %2 in 2 : vector<8x16x1xf32>, vector<8x16x16xf32>, vector<8x16x1xf32> -> vector<8x16x18xf32>
    %c0_2 = arith.constant 0 : index
    %c1 = arith.constant 1 : index
    %c0_3 = arith.constant 0 : index
    %4 = vector.load %arg2[%c0_2, %c1, %c0_3] : memref<8x18x18xf32, #tpu.memory_space<vmem>>, vector<8x16x18xf32>
    tpu.vector_store %arg2[%c0_2, %c1, %c0_3], %3 {strides = array<i32>} : memref<8x18x18xf32, #tpu.memory_space<vmem>>, vector<8x16x18xf32>,
    %c0_4 = arith.constant 0 : index
    %c0_5 = arith.constant 0 : index
    %c0_6 = arith.constant 0 : index
    %5 = vector.load %arg1[%c0_4, %c0_5, %c0_6] : memref<8x16x16xf32, #tpu.memory_space<vmem>>, vector<8x1x16xf32>
    %6 = vector.extract_strided_slice %5 {offsets = [0, 0, 0], sizes = [8, 1, 1], strides = [1, 1, 1]} : vector<8x1x16xf32> to vector<8x1x1xf32>
    %7 = vector.extract_strided_slice %5 {offsets = [0, 0, 15], sizes = [8, 1, 1], strides = [1, 1, 1]} : vector<8x1x16xf32> to vector<8x1x1xf32>
    %8 = tpu.concatenate %6, %5, %7 in 2 : vector<8x1x1xf32>, vector<8x1x16xf32>, vector<8x1x1xf32> -> vector<8x1x18xf32>
    %c0_7 = arith.constant 0 : index
    %c15 = arith.constant 15 : index
    %c0_8 = arith.constant 0 : index
    %9 = vector.load %arg1[%c0_7, %c15, %c0_8] : memref<8x16x16xf32, #tpu.memory_space<vmem>>, vector<8x1x16xf32>
    %10 = vector.extract_strided_slice %9 {offsets = [0, 0, 0], sizes = [8, 1, 1], strides = [1, 1, 1]} : vector<8x1x16xf32> to vector<8x1x1xf32>
    %11 = vector.extract_strided_slice %9 {offsets = [0, 0, 15], sizes = [8, 1, 1], strides = [1, 1, 1]} : vector<8x1x16xf32> to vector<8x1x1xf32>
    %12 = tpu.concatenate %10, %9, %11 in 2 : vector<8x1x1xf32>, vector<8x1x16xf32>, vector<8x1x1xf32> -> vector<8x1x18xf32>
    %c0_9 = arith.constant 0 : index
    %c0_10 = arith.constant 0 : index
    %c0_11 = arith.constant 0 : index
    %13 = vector.load %arg2[%c0_9, %c0_10, %c0_11] : memref<8x18x18xf32, #tpu.memory_space<vmem>>, vector<8x1x18xf32>
    tpu.vector_store %arg2[%c0_9, %c0_10, %c0_11], %8 {strides = array<i32>} : memref<8x18x18xf32, #tpu.memory_space<vmem>>, vector<8x1x18xf32>,
    %c0_12 = arith.constant 0 : index
    %c17 = arith.constant 17 : index
    %c0_13 = arith.constant 0 : index
    %14 = vector.load %arg2[%c0_12, %c17, %c0_13] : memref<8x18x18xf32, #tpu.memory_space<vmem>>, vector<8x1x18xf32>
    tpu.vector_store %arg2[%c0_12, %c17, %c0_13], %12 {strides = array<i32>} : memref<8x18x18xf32, #tpu.memory_space<vmem>>, vector<8x1x18xf32>,
    return
  }
  func.func @transform_0(%arg0: i32) -> (i32, i32, i32) {
    %c0_i32 = arith.constant 0 : i32
    %c0_i32_0 = arith.constant 0 : i32
    %c0_i32_1 = arith.constant 0 : i32
    return %arg0, %c0_i32, %c0_i32_0 : i32, i32, i32
  }
  func.func @transform_1(%arg0: i32) -> (i32, i32, i32) {
    %c0_i32 = arith.constant 0 : i32
    %c0_i32_0 = arith.constant 0 : i32
    %c0_i32_1 = arith.constant 0 : i32
    return %arg0, %c0_i32, %c0_i32_0 : i32, i32, i32
  }
}

</mosaic_0001>

<bundles_post_ra>
// kernel: tpu_custom_call.1
= control target key start
LH: loop header
LB: loop body
LE: loop exit
PB: predicated region body
PF: predicated region fallthrough
CT: control target
= control target key end

     0   :  { %6 = vsyncpa [#allocation3], 0  ;;  %s412_s6 = smov [#allocation2]   ;;  %s855_s0 = inlined_call_operand.hbm [shape: f32[8,16,16], index: 0, kind: input, shape index: {}]   ;;  %s856_s1 = inlined_call_operand.vmem [shape: f32[8,18,18], index: 1, kind: output, shape index: {}]  }
   0x1   :  { %s12_s7 = sshll.u32 %s412_s6, 4  ;;  %s388_s10 = scalar_lea.hbm %s855_s0, 2048  ;;  %s13_s7 = int_to_ptr.vmem [resolvable:$true] %s12_s7 }
   0x2   :  { %p389_p0 = scmp.ne.s32.totalorder %s855_s0, %s388_s10  ;;  %p392_p1 = scmp.lt.u32.totalorder %s388_s10, %s855_s0 }
   0x4   :  { %p394_p2 = pnand %p392_p1, %p389_p0 }
   0x6   :  { %397 = shalt.err (!%p394_p2)
}
   0x7   :  { %s398_s15 = scalar_lea.vmem %s13_s7, 2048  ;;  %p403_p4 = scmp.lt.s32.totalorder %s13_s7, %s13_s7 }
   0x8   :  { %p399_p3 = scmp.ne.s32.totalorder %s13_s7, %s398_s15  ;;  %p404_p5 = scmp.lt.s32.totalorder %s398_s15, %s398_s15 }
   0xa   :  { %p405_p6 = por %p404_p5, %p403_p4 }
   0xc   :  { %p406_p7 = pnand %p405_p6, %p399_p3 }
   0xe   :  { %409 = shalt.err (!%p406_p7)
}
   0xf   :  { %s413_s16 = smov 128   ;;  %s414_s17 = smov 8  }
  0x10   :  { %18 = dma.hbm_to_vmem [thread:$0]  %s855_s0, 2048, %s13_s7, [#allocation3], %s413_s16, %s413_s16, %s414_s17  }
  0x11   :  { %410 = dma.done.wait [#allocation3], 2048  }
  0x12   :  { %411 = vsyncadd [#allocation3], 4294965248  ;;  %v439_v0 = vld [vmem:[#allocation2 + $0x10] sm:$0xff]  ;;  %v441_v1 = vld [vmem:[#allocation2] sm:$0xff]  ;;  %s415_s20 = smov 1   ;;  %s416_s0 = smov 2  }
  0x13   :  { %58 = vrot.lane.b32.xlu1 %v439_v0, %s415_s20  ;;  %54 = vrot.lane.b32.xlu0 %v441_v1, %s415_s20  ;;  %v447_v2 = vld [vmem:[#allocation2 + $0x18] sm:$0xff]  ;;  %v449_v3 = vld [vmem:[#allocation2 + $0x8] sm:$0xff]  ;;  %v457_v5 = vld [vmem:[#allocation2 + $0x20] sm:$0xff]  ;;  %vm150_vm0 = vcmask 7168   ;;  %vm167_vm1 = vcmask 138240   ;;  %vm184_vm2 = vcmask 146432  }
  0x14   :  { %v455_v4 = vld [vmem:[#allocation2 + $0x28] sm:$0xff]  ;;  %v463_v6 = vld [vmem:[#allocation2 + $0x38] sm:$0xff]  ;;  %v465_v7 = vld [vmem:[#allocation2 + $0x30] sm:$0xff]  ;;  %vm361_vm3 = vcmask 139264  }
  0x15   :  { %v471_v8 = vld [vmem:[#allocation2 + $0x48] sm:$0xff]  ;;  %v473_v9 = vld [vmem:[#allocation2 + $0x40] sm:$0xff]  ;;  %v479_v10 = vld [vmem:[#allocation2 + $0x58] sm:$0xff] }
  0x16   :  { %v481_v11 = vld [vmem:[#allocation2 + $0x50] sm:$0xff]  ;;  %v487_v12 = vld [vmem:[#allocation2 + $0x68] sm:$0xff]  ;;  %v489_v13 = vld [vmem:[#allocation2 + $0x60] sm:$0xff] }
  0x17   :  { %60 = vrot.lane.b32.xlu1 %v447_v2, %s415_s20  ;;  %56 = vrot.lane.b32.xlu0 %v449_v3, %s415_s20  ;;  %v495_v14 = vld [vmem:[#allocation2 + $0x78] sm:$0xff]  ;;  %v497_v15 = vld [vmem:[#allocation2 + $0x70] sm:$0xff]  ;;  %v537_v17 = vld [vmem:[#allocation2] sm:$0x1] }
  0x18   :  { %v535_v16 = vld [vmem:[#allocation2 + $0x10] sm:$0x1]  ;;  %v545_v19 = vld [vmem:[#allocation2 + $0x20] sm:$0x1]  ;;  %v567_v24 = vld [vmem:[#allocation2 + $0x1f] sm:$0x1] }
  0x19   :  { %v543_v18 = vld [vmem:[#allocation2 + $0x30] sm:$0x1]  ;;  %v553_v21 = vld [vmem:[#allocation2 + $0x40] sm:$0x1]  ;;  %v569_v25 = vld [vmem:[#allocation2 + $0xf] sm:$0x1] }
  0x1a   :  { %v551_v20 = vld [vmem:[#allocation2 + $0x50] sm:$0x1]  ;;  %v561_v23 = vld [vmem:[#allocation2 + $0x60] sm:$0x1]  ;;  %v575_v26 = vld [vmem:[#allocation2 + $0x3f] sm:$0x1] }
  0x1b   :  { %64 = vrot.lane.b32.xlu1 %v455_v4, %s415_s20  ;;  %62 = vrot.lane.b32.xlu0 %v457_v5, %s415_s20  ;;  %v559_v22 = vld [vmem:[#allocation2 + $0x70] sm:$0x1]  ;;  %v577_v27 = vld [vmem:[#allocation2 + $0x2f] sm:$0x1]  ;;  %v583_v28 = vld [vmem:[#allocation2 + $0x5f] sm:$0x1] }
  0x1c   :  { %v585_v29 = vld [vmem:[#allocation2 + $0x4f] sm:$0x1]  ;;  %v591_v30 = vld [vmem:[#allocation2 + $0x7f] sm:$0x1] }
  0x1d   :  { %v593_v31 = vld [vmem:[#allocation2 + $0x6f] sm:$0x1] }
  0x1f   :  { %68 = vrot.lane.b32.xlu1 %v463_v6, %s415_s20  ;;  %66 = vrot.lane.b32.xlu0 %v465_v7, %s415_s20 }
  0x23   :  { %72 = vrot.lane.b32.xlu1 %v471_v8, %s415_s20  ;;  %70 = vrot.lane.b32.xlu0 %v473_v9, %s415_s20 }
  0x27   :  { %76 = vrot.lane.b32.xlu1 %v479_v10, %s415_s20  ;;  %74 = vrot.lane.b32.xlu0 %v481_v11, %s415_s20 }
  0x2b   :  { %80 = vrot.lane.b32.xlu1 %v487_v12, %s415_s20  ;;  %78 = vrot.lane.b32.xlu0 %v489_v13, %s415_s20 }
  0x2f   :  { %84 = vrot.lane.b32.xlu1 %v495_v14, %s415_s20  ;;  %82 = vrot.lane.b32.xlu0 %v497_v15, %s415_s20 }
  0x33   :  { %104 = vrot.lane.b32.xlu1 %v449_v3, %s416_s0  ;;  %102 = vrot.lane.b32.xlu0 %v441_v1, %s416_s0 }
  0x37   :  { %108 = vrot.lane.b32.xlu1 %v447_v2, %s416_s0  ;;  %106 = vrot.lane.b32.xlu0 %v439_v0, %s416_s0 }
  0x3b   :  { %112 = vrot.lane.b32.xlu1 %v455_v4, %s416_s0  ;;  %110 = vrot.lane.b32.xlu0 %v457_v5, %s416_s0 }
  0x3f   :  { %116 = vrot.lane.b32.xlu1 %v463_v6, %s416_s0  ;;  %114 = vrot.lane.b32.xlu0 %v465_v7, %s416_s0 }
  0x43   :  { %120 = vrot.lane.b32.xlu1 %v471_v8, %s416_s0  ;;  %118 = vrot.lane.b32.xlu0 %v473_v9, %s416_s0 }
  0x47   :  { %124 = vrot.lane.b32.xlu1 %v479_v10, %s416_s0  ;;  %122 = vrot.lane.b32.xlu0 %v481_v11, %s416_s0 }
  0x4b   :  { %128 = vrot.lane.b32.xlu1 %v487_v12, %s416_s0  ;;  %126 = vrot.lane.b32.xlu0 %v489_v13, %s416_s0 }
  0x4f   :  { %132 = vrot.lane.b32.xlu1 %v495_v14, %s416_s0  ;;  %130 = vrot.lane.b32.xlu0 %v497_v15, %s416_s0 }
  0x53   :  { %219 = vrot.lane.b32.xlu1 %v535_v16, %s415_s20  ;;  %217 = vrot.lane.b32.xlu0 %v537_v17, %s415_s20 }
  0x57   :  { %223 = vrot.lane.b32.xlu1 %v543_v18, %s415_s20  ;;  %221 = vrot.lane.b32.xlu0 %v545_v19, %s415_s20 }
  0x5b   :  { %227 = vrot.lane.b32.xlu1 %v551_v20, %s415_s20  ;;  %225 = vrot.lane.b32.xlu0 %v553_v21, %s415_s20 }
  0x5f   :  { %231 = vrot.lane.b32.xlu1 %v559_v22, %s415_s20  ;;  %229 = vrot.lane.b32.xlu0 %v561_v23, %s415_s20 }
  0x63   :  { %299 = vrot.lane.b32.xlu1 %v567_v24, %s415_s20  ;;  %297 = vrot.lane.b32.xlu0 %v569_v25, %s415_s20 }
  0x67   :  { %303 = vrot.lane.b32.xlu1 %v575_v26, %s415_s20  ;;  %301 = vrot.lane.b32.xlu0 %v577_v27, %s415_s20 }
  0x6b   :  { %307 = vrot.lane.b32.xlu1 %v583_v28, %s415_s20  ;;  %305 = vrot.lane.b32.xlu0 %v585_v29, %s415_s20 }
  0x6f   :  { %311 = vrot.lane.b32.xlu1 %v591_v30, %s415_s20  ;;  %309 = vrot.lane.b32.xlu0 %v593_v31, %s415_s20 }
  0x73   :  { %243 = vrot.lane.b32.xlu1 %v535_v16, %s416_s0  ;;  %241 = vrot.lane.b32.xlu0 %v537_v17, %s416_s0 }
  0x77   :  { %247 = vrot.lane.b32.xlu1 %v543_v18, %s416_s0  ;;  %245 = vrot.lane.b32.xlu0 %v545_v19, %s416_s0 }
  0x7b   :  { %251 = vrot.lane.b32.xlu1 %v551_v20, %s416_s0  ;;  %249 = vrot.lane.b32.xlu0 %v553_v21, %s416_s0 }
  0x7f   :  { %255 = vrot.lane.b32.xlu1 %v559_v22, %s416_s0  ;;  %253 = vrot.lane.b32.xlu0 %v561_v23, %s416_s0 }
  0x83   :  { %323 = vrot.lane.b32.xlu1 %v567_v24, %s416_s0  ;;  %321 = vrot.lane.b32.xlu0 %v569_v25, %s416_s0 }
  0x85   :  { %v59_v32 = vpop.permute.xlu1 %58  ;;  %v55_v33 = vpop.permute.xlu0 %54 }
  0x86   :  { %v151_v48 = vsel %vm150_vm0, %v441_v1, %v55_v33  ;;  %v153_v54 = vsel %vm150_vm0, %v439_v0, %v59_v32 }
  0x87   :  { %327 = vrot.lane.b32.xlu1 %v575_v26, %s416_s0  ;;  %325 = vrot.lane.b32.xlu0 %v577_v27, %s416_s0 }
  0x89   :  { %v61_v34 = vpop.permute.xlu1 %60  ;;  %v57_v35 = vpop.permute.xlu0 %56 }
  0x8a   :  { %v152_v49 = vsel %vm150_vm0, %v449_v3, %v57_v35  ;;  %v154_v55 = vsel %vm150_vm0, %v447_v2, %v61_v34 }
  0x8b   :  { %331 = vrot.lane.b32.xlu1 %v583_v28, %s416_s0  ;;  %329 = vrot.lane.b32.xlu0 %v585_v29, %s416_s0 }
  0x8d   :  { %v65_v36 = vpop.permute.xlu1 %64  ;;  %v63_v37 = vpop.permute.xlu0 %62 }
  0x8e   :  { %v156_v60 = vsel %vm150_vm0, %v455_v4, %v65_v36  ;;  %v155_v61 = vsel %vm150_vm0, %v457_v5, %v63_v37 }
  0x8f   :  { %335 = vrot.lane.b32.xlu1 %v591_v30, %s416_s0  ;;  %333 = vrot.lane.b32.xlu0 %v593_v31, %s416_s0 }
  0x91   :  { %v69_v38 = vpop.permute.xlu1 %68  ;;  %v67_v39 = vpop.permute.xlu0 %66 }
  0x92   :  { %v158_v2 = vsel %vm150_vm0, %v463_v6, %v69_v38  ;;  %v157_v3 = vsel %vm150_vm0, %v465_v7, %v67_v39 }
  0x95   :  { %v73_v40 = vpop.permute.xlu1 %72  ;;  %v71_v41 = vpop.permute.xlu0 %70 }
  0x96   :  { %v160_v6 = vsel %vm150_vm0, %v471_v8, %v73_v40  ;;  %v159_v7 = vsel %vm150_vm0, %v473_v9, %v71_v41 }
  0x99   :  { %v77_v42 = vpop.permute.xlu1 %76  ;;  %v75_v43 = vpop.permute.xlu0 %74 }
  0x9a   :  { %v162_v8 = vsel %vm150_vm0, %v479_v10, %v77_v42  ;;  %v161_v9 = vsel %vm150_vm0, %v481_v11, %v75_v43 }
  0x9d   :  { %v81_v44 = vpop.permute.xlu1 %80  ;;  %v79_v45 = vpop.permute.xlu0 %78 }
  0x9e   :  { %v164_v10 = vsel %vm150_vm0, %v487_v12, %v81_v44  ;;  %v163_v11 = vsel %vm150_vm0, %v489_v13, %v79_v45 }
  0xa1   :  { %v85_v46 = vpop.permute.xlu1 %84  ;;  %v83_v47 = vpop.permute.xlu0 %82 }
  0xa2   :  { %v166_v12 = vsel %vm150_vm0, %v495_v14, %v85_v46  ;;  %v165_v13 = vsel %vm150_vm0, %v497_v15, %v83_v47 }
  0xa5   :  { %v105_v50 = vpop.permute.xlu1 %104  ;;  %v103_v51 = vpop.permute.xlu0 %102 }
  0xa6   :  { %v169_v52 = vsel %vm167_vm1, %v152_v49, %v105_v50  ;;  %v168_v53 = vsel %vm167_vm1, %v151_v48, %v103_v51 }
  0xa7   :  { %186 = vst.msk [vmem:[%s856_s1 + $0x9] sm:$0xff] %vm184_vm2, %v169_v52  ;;  %185 = vst.msk [vmem:[%s856_s1 + $0x1] sm:$0xff] %vm184_vm2, %v168_v53 }
  0xa9   :  { %v109_v56 = vpop.permute.xlu1 %108  ;;  %v107_v57 = vpop.permute.xlu0 %106 }
  0xaa   :  { %v171_v58 = vsel %vm167_vm1, %v154_v55, %v109_v56  ;;  %v170_v59 = vsel %vm167_vm1, %v153_v54, %v107_v57 }
  0xab   :  { %188 = vst.msk [vmem:[%s856_s1 + $0x21] sm:$0xff] %vm184_vm2, %v171_v58  ;;  %187 = vst.msk [vmem:[%s856_s1 + $0x19] sm:$0xff] %vm184_vm2, %v170_v59 }
  0xad   :  { %v113_v62 = vpop.permute.xlu1 %112  ;;  %v111_v63 = vpop.permute.xlu0 %110 }
  0xae   :  { %v173_v0 = vsel %vm167_vm1, %v156_v60, %v113_v62  ;;  %v172_v1 = vsel %vm167_vm1, %v155_v61, %v111_v63 }
  0xaf   :  { %190 = vst.msk [vmem:[%s856_s1 + $0x39] sm:$0xff] %vm184_vm2, %v173_v0  ;;  %189 = vst.msk [vmem:[%s856_s1 + $0x31] sm:$0xff] %vm184_vm2, %v172_v1 }
  0xb1   :  { %v117_v4 = vpop.permute.xlu1 %116  ;;  %v115_v5 = vpop.permute.xlu0 %114 }
  0xb2   :  { %v175_v32 = vsel %vm167_vm1, %v158_v2, %v117_v4  ;;  %v174_v33 = vsel %vm167_vm1, %v157_v3, %v115_v5 }
  0xb3   :  { %192 = vst.msk [vmem:[%s856_s1 + $0x51] sm:$0xff] %vm184_vm2, %v175_v32  ;;  %191 = vst.msk [vmem:[%s856_s1 + $0x49] sm:$0xff] %vm184_vm2, %v174_v33 }
  0xb5   :  { %v121_v34 = vpop.permute.xlu1 %120  ;;  %v119_v35 = vpop.permute.xlu0 %118 }
  0xb6   :  { %v177_v36 = vsel %vm167_vm1, %v160_v6, %v121_v34  ;;  %v176_v37 = vsel %vm167_vm1, %v159_v7, %v119_v35 }
  0xb7   :  { %194 = vst.msk [vmem:[%s856_s1 + $0x69] sm:$0xff] %vm184_vm2, %v177_v36  ;;  %193 = vst.msk [vmem:[%s856_s1 + $0x61] sm:$0xff] %vm184_vm2, %v176_v37 }
  0xb9   :  { %v125_v38 = vpop.permute.xlu1 %124  ;;  %v123_v39 = vpop.permute.xlu0 %122 }
  0xba   :  { %v179_v40 = vsel %vm167_vm1, %v162_v8, %v125_v38  ;;  %v178_v41 = vsel %vm167_vm1, %v161_v9, %v123_v39 }
  0xbb   :  { %196 = vst.msk [vmem:[%s856_s1 + $0x81] sm:$0xff] %vm184_vm2, %v179_v40  ;;  %195 = vst.msk [vmem:[%s856_s1 + $0x79] sm:$0xff] %vm184_vm2, %v178_v41 }
  0xbd   :  { %v129_v42 = vpop.permute.xlu1 %128  ;;  %v127_v43 = vpop.permute.xlu0 %126 }
  0xbe   :  { %v181_v48 = vsel %vm167_vm1, %v164_v10, %v129_v42  ;;  %v180_v49 = vsel %vm167_vm1, %v163_v11, %v127_v43 }
  0xbf   :  { %198 = vst.msk [vmem:[%s856_s1 + $0x99] sm:$0xff] %vm184_vm2, %v181_v48  ;;  %197 = vst.msk [vmem:[%s856_s1 + $0x91] sm:$0xff] %vm184_vm2, %v180_v49 }
  0xc1   :  { %v133_v44 = vpop.permute.xlu1 %132  ;;  %v131_v45 = vpop.permute.xlu0 %130 }
  0xc2   :  { %v183_v50 = vsel %vm167_vm1, %v166_v12, %v133_v44  ;;  %v182_v51 = vsel %vm167_vm1, %v165_v13, %v131_v45 }
  0xc3   :  { %200 = vst.msk [vmem:[%s856_s1 + $0xb1] sm:$0xff] %vm184_vm2, %v183_v50  ;;  %199 = vst.msk [vmem:[%s856_s1 + $0xa9] sm:$0xff] %vm184_vm2, %v182_v51 }
  0xc5   :  { %v220_v14 = vpop.permute.xlu1 %219  ;;  %v218_v46 = vpop.permute.xlu0 %217 }
  0xc6   :  { %v266_v0 = vsel %vm150_vm0, %v535_v16, %v220_v14  ;;  %v265_v1 = vsel %vm150_vm0, %v537_v17, %v218_v46 }
  0xc9   :  { %v224_v52 = vpop.permute.xlu1 %223  ;;  %v222_v15 = vpop.permute.xlu0 %221 }
  0xca   :  { %v268_v16 = vsel %vm150_vm0, %v543_v18, %v224_v52  ;;  %v267_v17 = vsel %vm150_vm0, %v545_v19, %v222_v15 }
  0xcd   :  { %v228_v47 = vpop.permute.xlu1 %227  ;;  %v226_v53 = vpop.permute.xlu0 %225 }
  0xce   :  { %v270_v18 = vsel %vm150_vm0, %v551_v20, %v228_v47  ;;  %v269_v19 = vsel %vm150_vm0, %v553_v21, %v226_v53 }
  0xd1   :  { %v232_v54 = vpop.permute.xlu1 %231  ;;  %v230_v55 = vpop.permute.xlu0 %229 }
  0xd2   :  { %v272_v20 = vsel %vm150_vm0, %v559_v22, %v232_v54  ;;  %v271_v21 = vsel %vm150_vm0, %v561_v23, %v230_v55 }
  0xd5   :  { %v300_v56 = vpop.permute.xlu1 %299  ;;  %v298_v57 = vpop.permute.xlu0 %297 }
  0xd6   :  { %v346_v22 = vsel %vm150_vm0, %v567_v24, %v300_v56  ;;  %v345_v23 = vsel %vm150_vm0, %v569_v25, %v298_v57 }
  0xd9   :  { %v304_v58 = vpop.permute.xlu1 %303  ;;  %v302_v59 = vpop.permute.xlu0 %301 }
  0xda   :  { %v348_v24 = vsel %vm150_vm0, %v575_v26, %v304_v58  ;;  %v347_v25 = vsel %vm150_vm0, %v577_v27, %v302_v59 }
  0xdd   :  { %v308_v60 = vpop.permute.xlu1 %307  ;;  %v306_v61 = vpop.permute.xlu0 %305 }
  0xde   :  { %v350_v26 = vsel %vm150_vm0, %v583_v28, %v308_v60  ;;  %v349_v27 = vsel %vm150_vm0, %v585_v29, %v306_v61 }
  0xe1   :  { %v312_v62 = vpop.permute.xlu1 %311  ;;  %v310_v63 = vpop.permute.xlu0 %309 }
  0xe2   :  { %v352_v28 = vsel %vm150_vm0, %v591_v30, %v312_v62  ;;  %v351_v29 = vsel %vm150_vm0, %v593_v31, %v310_v63 }
  0xe5   :  { %v244_v2 = vpop.permute.xlu1 %243  ;;  %v242_v3 = vpop.permute.xlu0 %241 }
  0xe6   :  { %v274_v4 = vsel %vm167_vm1, %v266_v0, %v244_v2  ;;  %v273_v5 = vsel %vm167_vm1, %v265_v1, %v242_v3 }
  0xe7   :  { %363 = vst.msk [vmem:[%s856_s1 + $0x18] sm:$0x1] %vm361_vm3, %v274_v4  ;;  %362 = vst.msk [vmem:[%s856_s1] sm:$0x1] %vm361_vm3, %v273_v5 }
  0xe9   :  { %v248_v32 = vpop.permute.xlu1 %247  ;;  %v246_v33 = vpop.permute.xlu0 %245 }
  0xea   :  { %v276_v6 = vsel %vm167_vm1, %v268_v16, %v248_v32  ;;  %v275_v7 = vsel %vm167_vm1, %v267_v17, %v246_v33 }
  0xeb   :  { %365 = vst.msk [vmem:[%s856_s1 + $0x48] sm:$0x1] %vm361_vm3, %v276_v6  ;;  %364 = vst.msk [vmem:[%s856_s1 + $0x30] sm:$0x1] %vm361_vm3, %v275_v7 }
  0xed   :  { %v252_v34 = vpop.permute.xlu1 %251  ;;  %v250_v35 = vpop.permute.xlu0 %249 }
  0xee   :  { %v278_v36 = vsel %vm167_vm1, %v270_v18, %v252_v34  ;;  %v277_v37 = vsel %vm167_vm1, %v269_v19, %v250_v35 }
  0xef   :  { %367 = vst.msk [vmem:[%s856_s1 + $0x78] sm:$0x1] %vm361_vm3, %v278_v36  ;;  %366 = vst.msk [vmem:[%s856_s1 + $0x60] sm:$0x1] %vm361_vm3, %v277_v37 }
  0xf1   :  { %v256_v8 = vpop.permute.xlu1 %255  ;;  %v254_v9 = vpop.permute.xlu0 %253 }
  0xf2   :  { %v280_v38 = vsel %vm167_vm1, %v272_v20, %v256_v8  ;;  %v279_v39 = vsel %vm167_vm1, %v271_v21, %v254_v9 }
  0xf3   :  { %369 = vst.msk [vmem:[%s856_s1 + $0xa8] sm:$0x1] %vm361_vm3, %v280_v38  ;;  %368 = vst.msk [vmem:[%s856_s1 + $0x90] sm:$0x1] %vm361_vm3, %v279_v39 }
  0xf5   :  { %v324_v40 = vpop.permute.xlu1 %323  ;;  %v322_v41 = vpop.permute.xlu0 %321 }
  0xf6   :  { %v354_v10 = vsel %vm167_vm1, %v346_v22, %v324_v40  ;;  %v353_v11 = vsel %vm167_vm1, %v345_v23, %v322_v41 }
  0xf7   :  { %371 = vst.msk [vmem:[%s856_s1 + $0x29] sm:$0x1] %vm361_vm3, %v354_v10  ;;  %370 = vst.msk [vmem:[%s856_s1 + $0x11] sm:$0x1] %vm361_vm3, %v353_v11 }
  0xf9   :  { %v328_v42 = vpop.permute.xlu1 %327  ;;  %v326_v43 = vpop.permute.xlu0 %325 }
  0xfa   :  { %v356_v48 = vsel %vm167_vm1, %v348_v24, %v328_v42  ;;  %v355_v49 = vsel %vm167_vm1, %v347_v25, %v326_v43 }
  0xfb   :  { %373 = vst.msk [vmem:[%s856_s1 + $0x59] sm:$0x1] %vm361_vm3, %v356_v48  ;;  %372 = vst.msk [vmem:[%s856_s1 + $0x41] sm:$0x1] %vm361_vm3, %v355_v49 }
  0xfd   :  { %v332_v12 = vpop.permute.xlu1 %331  ;;  %v330_v13 = vpop.permute.xlu0 %329 }
  0xfe   :  { %v358_v44 = vsel %vm167_vm1, %v350_v26, %v332_v12  ;;  %v357_v45 = vsel %vm167_vm1, %v349_v27, %v330_v13 }
  0xff   :  { %375 = vst.msk [vmem:[%s856_s1 + $0x89] sm:$0x1] %vm361_vm3, %v358_v44  ;;  %374 = vst.msk [vmem:[%s856_s1 + $0x71] sm:$0x1] %vm361_vm3, %v357_v45 }
 0x101   :  { %v336_v50 = vpop.permute.xlu1 %335  ;;  %v334_v51 = vpop.permute.xlu0 %333 }
 0x102   :  { %v360_v14 = vsel %vm167_vm1, %v352_v28, %v336_v50  ;;  %v359_v46 = vsel %vm167_vm1, %v351_v29, %v334_v51 }
 0x103   :  { %377 = vst.msk [vmem:[%s856_s1 + $0xb9] sm:$0x1] %vm361_vm3, %v360_v14  ;;  %376 = vst.msk [vmem:[%s856_s1 + $0xa1] sm:$0x1] %vm361_vm3, %v359_v46 }
 0x104   :  { %382 = vsyncpa [#allocation3], 1 }

</bundles_post_ra>
